<compile_context>
chip_gen: v5e
topology: v5e:2x2
jax: 0.10.0
libtpu: 0.0.40
codegen_flags: <defaults>
</compile_context>

<pallas_src>
import jax
import jax.numpy as jnp
import numpy as np
from jax.experimental import pallas as pl
from jax.experimental.pallas import tpu as pltpu


def _round_up(x, m):
    return (x + m - 1) // m * m


def _tpu_vmem_capacity_bytes():
    # v5e/v6e: 128 MiB VMEM per TensorCore, v7x: 64 MiB. Gate budgets on the
    # queried capacity; fall back to the most conservative value (v7x).
    try:
        cap = int(getattr(pltpu.get_tpu_info(), "vmem_capacity_bytes", 0))
        if cap > 0:
            return cap
    except Exception:
        pass
    return 64 * 1024 * 1024


# --------------------------------------------------------------------------
# Lookup mode (use_tfidf=False):  y = weight[x]
# --------------------------------------------------------------------------
def embedder_forward_lookup(x_idx, weight):
    """use_tfidf=False path: y = weight[x_idx] -> (B, S, D)."""
    B, S = x_idx.shape
    V, D = weight.shape
    N = B * S
    itemsize = jnp.dtype(weight.dtype).itemsize

    flat_idx = x_idx.reshape(N).astype(jnp.int32)

    cap = _tpu_vmem_capacity_bytes()
    resident_budget = (cap * 3) // 8  # ~24 MiB on v7x, ~48 MiB on v5e/v6e
    if V * D * itemsize <= resident_budget:
        return _lookup_resident(flat_idx, weight, B, S, N)
    return _lookup_dma_gather(flat_idx, weight, B, S, N)


def _lookup_resident(flat_idx, weight, B, S, N):
    """Whole table resident in VMEM; gather rows with SMEM-prefetched indices."""
    V, D = weight.shape
    itemsize = jnp.dtype(weight.dtype).itemsize

    rows_per_step = min(64, max(16, _round_up(N, 16)))  # multiple of 16 (bf16-safe)
    n_pad = _round_up(N, rows_per_step)
    if n_pad != N:  # no-pad fast path when N is already a multiple
        flat_idx = jnp.concatenate([flat_idx, jnp.zeros((n_pad - N,), jnp.int32)])
    num_blocks = n_pad // rows_per_step

    lane_dense = D < 128  # concatenate rows along lanes for a lane-dense store

    def kernel(idx_ref, w_ref, out_ref):
        # idx_ref: (n_pad,) int32 in SMEM (scalar prefetch)
        # w_ref:   (V, D) weight, resident in VMEM (constant index_map)
        base = pl.program_id(0) * rows_per_step
        rows = [w_ref[pl.ds(idx_ref[base + k], 1), :] for k in range(rows_per_step)]
        if lane_dense:
            out_ref[...] = jnp.concatenate(rows, axis=1).reshape(
                1, 1, rows_per_step * D)
        else:
            out_ref[...] = jnp.concatenate(rows, axis=0)

    if lane_dense:
        out_shape = jax.ShapeDtypeStruct((num_blocks, 1, rows_per_step * D),
                                         weight.dtype)
        out_spec = pl.BlockSpec((1, 1, rows_per_step * D), lambda i, ids: (i, 0, 0))
    else:
        out_shape = jax.ShapeDtypeStruct((n_pad, D), weight.dtype)
        out_spec = pl.BlockSpec((rows_per_step, D), lambda i, ids: (i, 0))

    cap = _tpu_vmem_capacity_bytes()
    vmem_limit = int(min(cap * 3 // 4,
                         max(32 * 1024 * 1024, V * D * itemsize + 8 * 1024 * 1024)))

    cost = pl.CostEstimate(
        flops=0,
        transcendentals=0,
        bytes_accessed=V * D * itemsize + 2 * n_pad * D * itemsize + n_pad * 4,
    )

    out = pl.pallas_call(
        kernel,
        out_shape=out_shape,
        grid_spec=pltpu.PrefetchScalarGridSpec(
            num_scalar_prefetch=1,
            grid=(num_blocks,),
            # Constant block index -> weight DMA'd to VMEM once, reused across steps.
            in_specs=[pl.BlockSpec((V, D), lambda i, ids: (0, 0))],
            out_specs=out_spec,
        ),
        compiler_params=pltpu.CompilerParams(
            dimension_semantics=("parallel",),
            vmem_limit_bytes=vmem_limit,
        ),
        cost_estimate=cost,
    )(flat_idx, weight)

    out = out.reshape(n_pad, D)
    if n_pad != N:
        out = out[:N]
    return out.reshape(B, S, D)


_DMA_ROWS = 32  # rows gathered per grid step on the HBM DMA-gather fallback


def _dma_gather_kernel(idx_ref, *refs):
    # idx_ref consumed only by the index_maps.
    del idx_ref
    row_refs = refs[:_DMA_ROWS]          # each (1, D): one gathered row
    out_ref = refs[_DMA_ROWS]            # (_DMA_ROWS, D)
    out_ref[...] = jnp.concatenate([r[...] for r in row_refs], axis=0)


def _lookup_dma_gather(flat_idx, weight, B, S, N):
    """Fallback for tables larger than the VMEM residency budget."""
    V, D = weight.shape
    itemsize = jnp.dtype(weight.dtype).itemsize

    n_pad = _round_up(N, _DMA_ROWS)
    if n_pad != N:
        flat_idx = jnp.concatenate([flat_idx, jnp.zeros((n_pad - N,), jnp.int32)])
    num_blocks = n_pad // _DMA_ROWS

    def row_spec(k):
        return pl.BlockSpec(
            (pl.Element(1), D),
            lambda i, ids, k=k: (ids[i * _DMA_ROWS + k], 0),
        )

    grid_spec = pltpu.PrefetchScalarGridSpec(
        num_scalar_prefetch=1,
        grid=(num_blocks,),
        in_specs=[row_spec(k) for k in range(_DMA_ROWS)],
        out_specs=pl.BlockSpec((_DMA_ROWS, D), lambda i, ids: (i, 0)),
    )

    cost = pl.CostEstimate(
        flops=0,
        transcendentals=0,
        bytes_accessed=2 * n_pad * D * itemsize + n_pad * 4,
    )

    cap = _tpu_vmem_capacity_bytes()
    out_flat = pl.pallas_call(
        _dma_gather_kernel,
        out_shape=jax.ShapeDtypeStruct((n_pad, D), weight.dtype),
        grid_spec=grid_spec,
        compiler_params=pltpu.CompilerParams(
            dimension_semantics=("parallel",),
            vmem_limit_bytes=int(min(cap // 2, 64 * 1024 * 1024)),
        ),
        cost_estimate=cost,
    )(flat_idx, *([weight] * _DMA_ROWS))

    if n_pad != N:
        out_flat = out_flat[:N]
    return out_flat.reshape(B, S, D)


# --------------------------------------------------------------------------
# tf-idf mode (use_tfidf=True):  y = x @ weight
# --------------------------------------------------------------------------
def _tfidf_matmul_kernel(x_ref, w_ref, out_ref):
    partial = jnp.dot(x_ref[...], w_ref[...], preferred_element_type=jnp.float32)

    @pl.when(pl.program_id(2) == 0)
    def _():
        out_ref[...] = partial

    @pl.when(pl.program_id(2) != 0)
    def _():
        out_ref[...] = out_ref[...] + partial


def embedder_forward_tfidf(x_tfidf, weight, compute_dtype=jnp.float32):
    """use_tfidf=True path: y = x_tfidf @ weight -> (B, D), float32."""
    # TODO(synk): torch upcasts the weight to float64 for this matmul; the TPU
    #             MXU has no f64 path, so we accumulate in float32 instead.
    # TODO(synk): pass compute_dtype=jnp.bfloat16 for ~2-3x MXU throughput when
    #             the accuracy budget vs. the f64 reference allows it.
    B, V = x_tfidf.shape
    V2, D = weight.shape
    assert V == V2

    x = x_tfidf.astype(compute_dtype)
    w = weight.astype(compute_dtype)
    itemsize = jnp.dtype(compute_dtype).itemsize

    # MXU-friendly tiles: tm up to 256 feeds the 2x256x256 MXUs on v6e/v7x.
    tm = 256 if B >= 256 else _round_up(B, 8)
    tn = 256 if D >= 256 else _round_up(D, 128)
    tk = 1024 if V >= 1024 else _round_up(V, 128)

    b_pad = _round_up(B, tm)
    d_pad = _round_up(D, tn)
    v_pad = _round_up(V, tk)

    # v7x megacore: avoid a degenerate (1, 1, K) grid that idles one TensorCore
    # by giving the parallel j axis at least 2 blocks when possible.
    if b_pad // tm == 1 and d_pad // tn == 1 and tn > 128 and d_pad // 128 >= 2:
        tn = 128

    if (b_pad, v_pad) != (B, V):
        x = jnp.pad(x, ((0, b_pad - B), (0, v_pad - V)))
    if (v_pad, d_pad) != (V, D):
        # TODO(synk): for a long-lived module, pre-pad / cache the padded weight
        #             once instead of re-padding on every forward.
        w = jnp.pad(w, ((0, v_pad - V), (0, d_pad - D)))

    grid = (b_pad // tm, d_pad // tn, v_pad // tk)

    cost = pl.CostEstimate(
        flops=2 * b_pad * v_pad * d_pad,
        transcendentals=0,
        bytes_accessed=itemsize * (b_pad * v_pad + v_pad * d_pad)
        + 4 * b_pad * d_pad,
    )

    cap = _tpu_vmem_capacity_bytes()
    out = pl.pallas_call(
        _tfidf_matmul_kernel,
        out_shape=jax.ShapeDtypeStruct((b_pad, d_pad), jnp.float32),
        grid_spec=pltpu.PrefetchScalarGridSpec(
            num_scalar_prefetch=0,
            grid=grid,
            in_specs=[
                pl.BlockSpec((tm, tk), lambda i, j, k: (i, k)),
                pl.BlockSpec((tk, tn), lambda i, j, k: (k, j)),
            ],
            # Output block resident across k -> accumulate directly (no scratch).
            out_specs=pl.BlockSpec((tm, tn), lambda i, j, k: (i, j)),
        ),
        compiler_params=pltpu.CompilerParams(
            dimension_semantics=("parallel", "parallel", "arbitrary"),
            vmem_limit_bytes=int(min(cap // 2, 64 * 1024 * 1024)),
        ),
        cost_estimate=cost,
    )(x, w)

    if (b_pad, d_pad) != (B, D):
        out = out[:B, :D]
    return out


# --------------------------------------------------------------------------
# Parameter init (matches nn.Embedding default: N(0,1), padding_idx row zeroed)
# --------------------------------------------------------------------------
def init_embedding_weight(key, vocab_size, embedding_dim, padding_idx=1):
    w = jax.random.normal(key, (vocab_size, embedding_dim), dtype=jnp.float32)
    w = w.at[padding_idx].set(0.0)
    return w


# --------------------------------------------------------------------------
# main
# --------------------------------------------------------------------------
if __name__ == "__main__":
    key = jax.random.PRNGKey(0)
    k_w, k_idx, k_tfidf = jax.random.split(key, 3)

    vocab_size = 32
    embedding_dim = 32
    batch = 2
    seq = 8

    weight = init_embedding_weight(k_w, vocab_size, embedding_dim, padding_idx=1)

    # ---- lookup mode (use_tfidf=False): resident-table path ----
    x_idx = jax.random.randint(k_idx, (batch, seq), 0, vocab_size, dtype=jnp.int32)
    y_lookup = jax.block_until_ready(embedder_forward_lookup(x_idx, weight))
    ref_lookup = jnp.take(weight, x_idx, axis=0)
    assert y_lookup.shape == (batch, seq, embedding_dim)
    assert jnp.allclose(y_lookup, ref_lookup, atol=1e-6, rtol=1e-6)

    # Also exercise the HBM DMA-gather fallback (used for tables that exceed
    # the VMEM residency budget) to keep both paths validated.
    y_fallback = jax.block_until_ready(
        _lookup_dma_gather(x_idx.reshape(-1).astype(jnp.int32), weight,
                           batch, seq, batch * seq))
    assert y_fallback.shape == (batch, seq, embedding_dim)
    assert jnp.allclose(y_fallback, ref_lookup, atol=1e-6, rtol=1e-6)

    # ---- tf-idf mode (use_tfidf=True) ----
    x_tfidf = jax.random.uniform(k_tfidf, (batch, vocab_size), dtype=jnp.float32)
    y_tfidf = jax.block_until_ready(embedder_forward_tfidf(x_tfidf, weight))
    ref_tfidf = np.asarray(x_tfidf, dtype=np.float64) @ np.asarray(
        weight, dtype=np.float64)
    assert y_tfidf.shape == (batch, embedding_dim)
    assert np.allclose(np.asarray(y_tfidf, dtype=np.float64), ref_tfidf,
                       atol=1e-3, rtol=1e-3)

    print("KERNEL_OK")
</pallas_src>

<mosaic_0001>
module attributes {stable_mosaic.version = 11 : i64} {
  func.func @kernel(%arg0: i32, %arg1: memref<16xi32, #tpu.memory_space<smem>>, %arg2: memref<32x32xf32, #tpu.memory_space<vmem>>, %arg3: memref<1x1x512xf32, #tpu.memory_space<vmem>>) attributes {dimension_semantics = [#tpu.dimension_semantics<parallel>], iteration_bounds = array<i64: 1>, scalar_prefetch = 1 : i64, scratch_operands = 0 : i64, tpu.core_type = #tpu.core_type<tc>, window_params = [{pipeline_mode = #tpu.pipeline_mode<synchronous>, transform_indices = @transform_0, window_bounds = array<i64: 32, 32>}, {transform_indices = @transform_1, window_bounds = array<i64: 1, 1, 512>}]} {
    %c16_i32 = arith.constant 16 : i32
    %0 = arith.muli %arg0, %c16_i32 : i32
    %c0_i32 = arith.constant 0 : i32
    %1 = arith.addi %0, %c0_i32 : i32
    %2 = arith.index_cast %1 : i32 to index
    %3 = memref.load %arg1[%2] : memref<16xi32, #tpu.memory_space<smem>>
    %4 = arith.index_cast %3 : i32 to index
    %c0 = arith.constant 0 : index
    %5 = vector.load %arg2[%4, %c0] : memref<32x32xf32, #tpu.memory_space<vmem>>, vector<1x32xf32>
    %c1_i32 = arith.constant 1 : i32
    %6 = arith.addi %0, %c1_i32 : i32
    %7 = arith.index_cast %6 : i32 to index
    %8 = memref.load %arg1[%7] : memref<16xi32, #tpu.memory_space<smem>>
    %9 = arith.index_cast %8 : i32 to index
    %c0_0 = arith.constant 0 : index
    %10 = vector.load %arg2[%9, %c0_0] : memref<32x32xf32, #tpu.memory_space<vmem>>, vector<1x32xf32>
    %c2_i32 = arith.constant 2 : i32
    %11 = arith.addi %0, %c2_i32 : i32
    %12 = arith.index_cast %11 : i32 to index
    %13 = memref.load %arg1[%12] : memref<16xi32, #tpu.memory_space<smem>>
    %14 = arith.index_cast %13 : i32 to index
    %c0_1 = arith.constant 0 : index
    %15 = vector.load %arg2[%14, %c0_1] : memref<32x32xf32, #tpu.memory_space<vmem>>, vector<1x32xf32>
    %c3_i32 = arith.constant 3 : i32
    %16 = arith.addi %0, %c3_i32 : i32
    %17 = arith.index_cast %16 : i32 to index
    %18 = memref.load %arg1[%17] : memref<16xi32, #tpu.memory_space<smem>>
    %19 = arith.index_cast %18 : i32 to index
    %c0_2 = arith.constant 0 : index
    %20 = vector.load %arg2[%19, %c0_2] : memref<32x32xf32, #tpu.memory_space<vmem>>, vector<1x32xf32>
    %c4_i32 = arith.constant 4 : i32
    %21 = arith.addi %0, %c4_i32 : i32
    %22 = arith.index_cast %21 : i32 to index
    %23 = memref.load %arg1[%22] : memref<16xi32, #tpu.memory_space<smem>>
    %24 = arith.index_cast %23 : i32 to index
    %c0_3 = arith.constant 0 : index
    %25 = vector.load %arg2[%24, %c0_3] : memref<32x32xf32, #tpu.memory_space<vmem>>, vector<1x32xf32>
    %c5_i32 = arith.constant 5 : i32
    %26 = arith.addi %0, %c5_i32 : i32
    %27 = arith.index_cast %26 : i32 to index
    %28 = memref.load %arg1[%27] : memref<16xi32, #tpu.memory_space<smem>>
    %29 = arith.index_cast %28 : i32 to index
    %c0_4 = arith.constant 0 : index
    %30 = vector.load %arg2[%29, %c0_4] : memref<32x32xf32, #tpu.memory_space<vmem>>, vector<1x32xf32>
    %c6_i32 = arith.constant 6 : i32
    %31 = arith.addi %0, %c6_i32 : i32
    %32 = arith.index_cast %31 : i32 to index
    %33 = memref.load %arg1[%32] : memref<16xi32, #tpu.memory_space<smem>>
    %34 = arith.index_cast %33 : i32 to index
    %c0_5 = arith.constant 0 : index
    %35 = vector.load %arg2[%34, %c0_5] : memref<32x32xf32, #tpu.memory_space<vmem>>, vector<1x32xf32>
    %c7_i32 = arith.constant 7 : i32
    %36 = arith.addi %0, %c7_i32 : i32
    %37 = arith.index_cast %36 : i32 to index
    %38 = memref.load %arg1[%37] : memref<16xi32, #tpu.memory_space<smem>>
    %39 = arith.index_cast %38 : i32 to index
    %c0_6 = arith.constant 0 : index
    %40 = vector.load %arg2[%39, %c0_6] : memref<32x32xf32, #tpu.memory_space<vmem>>, vector<1x32xf32>
    %c8_i32 = arith.constant 8 : i32
    %41 = arith.addi %0, %c8_i32 : i32
    %42 = arith.index_cast %41 : i32 to index
    %43 = memref.load %arg1[%42] : memref<16xi32, #tpu.memory_space<smem>>
    %44 = arith.index_cast %43 : i32 to index
    %c0_7 = arith.constant 0 : index
    %45 = vector.load %arg2[%44, %c0_7] : memref<32x32xf32, #tpu.memory_space<vmem>>, vector<1x32xf32>
    %c9_i32 = arith.constant 9 : i32
    %46 = arith.addi %0, %c9_i32 : i32
    %47 = arith.index_cast %46 : i32 to index
    %48 = memref.load %arg1[%47] : memref<16xi32, #tpu.memory_space<smem>>
    %49 = arith.index_cast %48 : i32 to index
    %c0_8 = arith.constant 0 : index
    %50 = vector.load %arg2[%49, %c0_8] : memref<32x32xf32, #tpu.memory_space<vmem>>, vector<1x32xf32>
    %c10_i32 = arith.constant 10 : i32
    %51 = arith.addi %0, %c10_i32 : i32
    %52 = arith.index_cast %51 : i32 to index
    %53 = memref.load %arg1[%52] : memref<16xi32, #tpu.memory_space<smem>>
    %54 = arith.index_cast %53 : i32 to index
    %c0_9 = arith.constant 0 : index
    %55 = vector.load %arg2[%54, %c0_9] : memref<32x32xf32, #tpu.memory_space<vmem>>, vector<1x32xf32>
    %c11_i32 = arith.constant 11 : i32
    %56 = arith.addi %0, %c11_i32 : i32
    %57 = arith.index_cast %56 : i32 to index
    %58 = memref.load %arg1[%57] : memref<16xi32, #tpu.memory_space<smem>>
    %59 = arith.index_cast %58 : i32 to index
    %c0_10 = arith.constant 0 : index
    %60 = vector.load %arg2[%59, %c0_10] : memref<32x32xf32, #tpu.memory_space<vmem>>, vector<1x32xf32>
    %c12_i32 = arith.constant 12 : i32
    %61 = arith.addi %0, %c12_i32 : i32
    %62 = arith.index_cast %61 : i32 to index
    %63 = memref.load %arg1[%62] : memref<16xi32, #tpu.memory_space<smem>>
    %64 = arith.index_cast %63 : i32 to index
    %c0_11 = arith.constant 0 : index
    %65 = vector.load %arg2[%64, %c0_11] : memref<32x32xf32, #tpu.memory_space<vmem>>, vector<1x32xf32>
    %c13_i32 = arith.constant 13 : i32
    %66 = arith.addi %0, %c13_i32 : i32
    %67 = arith.index_cast %66 : i32 to index
    %68 = memref.load %arg1[%67] : memref<16xi32, #tpu.memory_space<smem>>
    %69 = arith.index_cast %68 : i32 to index
    %c0_12 = arith.constant 0 : index
    %70 = vector.load %arg2[%69, %c0_12] : memref<32x32xf32, #tpu.memory_space<vmem>>, vector<1x32xf32>
    %c14_i32 = arith.constant 14 : i32
    %71 = arith.addi %0, %c14_i32 : i32
    %72 = arith.index_cast %71 : i32 to index
    %73 = memref.load %arg1[%72] : memref<16xi32, #tpu.memory_space<smem>>
    %74 = arith.index_cast %73 : i32 to index
    %c0_13 = arith.constant 0 : index
    %75 = vector.load %arg2[%74, %c0_13] : memref<32x32xf32, #tpu.memory_space<vmem>>, vector<1x32xf32>
    %c15_i32 = arith.constant 15 : i32
    %76 = arith.addi %0, %c15_i32 : i32
    %77 = arith.index_cast %76 : i32 to index
    %78 = memref.load %arg1[%77] : memref<16xi32, #tpu.memory_space<smem>>
    %79 = arith.index_cast %78 : i32 to index
    %c0_14 = arith.constant 0 : index
    %80 = vector.load %arg2[%79, %c0_14] : memref<32x32xf32, #tpu.memory_space<vmem>>, vector<1x32xf32>
    %81 = tpu.concatenate %5, %10, %15, %20, %25, %30, %35, %40, %45, %50, %55, %60, %65, %70, %75, %80 in 1 : vector<1x32xf32>, vector<1x32xf32>, vector<1x32xf32>, vector<1x32xf32>, vector<1x32xf32>, vector<1x32xf32>, vector<1x32xf32>, vector<1x32xf32>, vector<1x32xf32>, vector<1x32xf32>, vector<1x32xf32>, vector<1x32xf32>, vector<1x32xf32>, vector<1x32xf32>, vector<1x32xf32>, vector<1x32xf32> -> vector<1x512xf32>
    %82 = vector.shape_cast %81 : vector<1x512xf32> to vector<1x1x512xf32>
    %c0_15 = arith.constant 0 : index
    %c0_16 = arith.constant 0 : index
    %c0_17 = arith.constant 0 : index
    %83 = vector.load %arg3[%c0_15, %c0_16, %c0_17] : memref<1x1x512xf32, #tpu.memory_space<vmem>>, vector<1x1x512xf32>
    tpu.vector_store %arg3[%c0_15, %c0_16, %c0_17], %82 {strides = array<i32>} : memref<1x1x512xf32, #tpu.memory_space<vmem>>, vector<1x1x512xf32>,
    return
  }
  func.func @transform_0(%arg0: i32, %arg1: memref<16xi32, #tpu.memory_space<smem>>) -> (i32, i32) {
    %c0_i32 = arith.constant 0 : i32
    %c0_i32_0 = arith.constant 0 : i32
    %c0_i32_1 = arith.constant 0 : i32
    return %c0_i32, %c0_i32_0 : i32, i32
  }
  func.func @transform_1(%arg0: i32, %arg1: memref<16xi32, #tpu.memory_space<smem>>) -> (i32, i32, i32) {
    %c0_i32 = arith.constant 0 : i32
    %c0_i32_0 = arith.constant 0 : i32
    %c0_i32_1 = arith.constant 0 : i32
    return %arg0, %c0_i32, %c0_i32_0 : i32, i32, i32
  }
}

</mosaic_0001>

<bundles_post_ra>
// kernel: tpu_custom_call.1
= control target key start
LH: loop header
LB: loop body
LE: loop exit
PB: predicated region body
PF: predicated region fallthrough
CT: control target
= control target key end

     0   :  { %s302_s12 = smov [#allocation3]   ;;  %s350_s0 = inlined_call_operand.hbm [shape: s32[16], index: 0, kind: input, shape index: {}]   ;;  %s351_s1 = inlined_call_operand.hbm [shape: f32[32,32], index: 1, kind: input, shape index: {}]   ;;  %s352_s2 = inlined_call_operand.hbm [shape: f32[1,1,512], index: 2, kind: output, shape index: {}]  }
   0x1   :  { %s8_s11 = sshll.u32 %s350_s0, 4  ;;  %s9_s11 = int_to_ptr.hbm [resolvable:$true] %s8_s11 }
   0x2   :  { %11 = dma.hbm_to_smem %s9_s11, 16, %s302_s12, [#allocation2] }
   0x3   :  { %296 = dma.done.wait [#allocation2], 16 }
   0x4   :  { %297 = vsyncadd [#allocation2], 4294967280 }
   0x5   :  { %14 = sfence }
   0x6   :  { %15 = vsyncpa [#allocation5], 0 }
   0x7   :  { %16 = vsyncpa [#allocation6], 0  ;;  %s21_s15 = sshll.u32 %s351_s1, 4  ;;  %s303_s16 = smov [#allocation4]   ;;  %s22_s15 = int_to_ptr.hbm [resolvable:$true] %s21_s15 }
   0x8   :  { %s23_s17 = sshll.u32 %s303_s16, 4  ;;  %s304_s18 = smov 128   ;;  %s24_s17 = int_to_ptr.vmem [resolvable:$true] %s23_s17 }
   0x9   :  { %s305_s19 = smov 8  }
   0xa   :  { %29 = dma.hbm_to_vmem [thread:$0]  %s22_s15, 512, %s24_s17, [#allocation5], %s304_s18, %s304_s18, %s305_s19  }
   0xb   :  { %298 = dma.done.wait [#allocation5], 512  }
   0xc   :  { %299 = vsyncadd [#allocation5], 4294966784  ;;  %s225_s0 = sld [smem:[#allocation3 + $0xd]]  ;;  %s306_s25 = smov 32   ;;  %vm146_vm0 = vcmask 261120   ;;  %vm148_vm1 = vcmask 523264   ;;  %v175_v35 = vlaneseq }
   0xd   :  { %s217_s20 = sld [smem:[#allocation3 + $0x5]]  ;;  %s307_s4 = smov 64   ;;  %vm150_vm2 = vcmask 785408   ;;  %vm168_vm3 = vcmask 1040384   ;;  %vm170_vm4 = vcmask 1042434   ;;  %vm172_vm5 = vcmask 1041408  }
   0xe   :  { %s218_s21 = sld [smem:[#allocation3 + $0x6]]  ;;  %s308_s11 = smov 96   ;;  %vm177_vm6 = vcmp.lt.s32.totalorder %v175_v35, 512 }
   0xf   :  { %s221_s22 = sld [smem:[#allocation3 + $0x9]] }
  0x10   :  { %s222_s23 = sld [smem:[#allocation3 + $0xa]] }
  0x11   :  { %s226_s26 = sld [smem:[#allocation3 + $0xe]] }
  0x12   :  { %s88_s24 = scalar_lea.vmem [#allocation4], %s225_s0  ;;  %s219_s27 = sld [smem:[#allocation3 + $0x7]] }
  0x13   :  { %v89_v0 = vld [vmem:[%s88_s24] sm:$0x1]  ;;  %s56_s1 = scalar_lea.vmem [#allocation4], %s217_s20  ;;  %s213_s28 = sld [smem:[#allocation3 + $0x1]] }
  0x14   :  { %135 = vrot.lane.b32.xlu1 %v89_v0, %s306_s25  ;;  %v57_v1 = vld [vmem:[%s56_s1] sm:$0x1]  ;;  %s60_s29 = scalar_lea.vmem [#allocation4], %s218_s21  ;;  %s223_s5 = sld [smem:[#allocation3 + $0xb]] }
  0x15   :  { %111 = vrot.lane.b32.xlu0 %v57_v1, %s306_s25  ;;  %v61_v2 = vld [vmem:[%s60_s29] sm:$0x1]  ;;  %s72_s3 = scalar_lea.vmem [#allocation4], %s221_s22  ;;  %s214_s6 = sld [smem:[#allocation3 + $0x2]] }
  0x16   :  { %s76_s30 = scalar_lea.vmem [#allocation4], %s222_s23  ;;  %v73_v4 = vld [vmem:[%s72_s3] sm:$0x1]  ;;  %s227_s7 = sld [smem:[#allocation3 + $0xf]] }
  0x17   :  { %v77_v3 = vld [vmem:[%s76_s30] sm:$0x1]  ;;  %s92_s8 = scalar_lea.vmem [#allocation4], %s226_s26  ;;  %s215_s12 = sld [smem:[#allocation3 + $0x3]] }
  0x18   :  { %127 = vrot.lane.b32.xlu2 %v77_v3, %s307_s4  ;;  %v93_v5 = vld [vmem:[%s92_s8] sm:$0x1]  ;;  %s64_s9 = scalar_lea.vmem [#allocation4], %s219_s27  ;;  %s220_s17 = sld [smem:[#allocation3 + $0x8]] }
  0x19   :  { %v65_v6 = vld [vmem:[%s64_s9] sm:$0x1]  ;;  %s40_s10 = scalar_lea.vmem [#allocation4], %s213_s28  ;;  %s216_s18 = sld [smem:[#allocation3 + $0x4]] }
  0x1a   :  { %v41_v7 = vld [vmem:[%s40_s10] sm:$0x1]  ;;  %s80_s13 = scalar_lea.vmem [#allocation4], %s223_s5  ;;  %s224_s19 = sld [smem:[#allocation3 + $0xc]] }
  0x1b   :  { %v81_v8 = vld [vmem:[%s80_s13] sm:$0x1]  ;;  %s44_s14 = scalar_lea.vmem [#allocation4], %s214_s6  ;;  %s35_s0 = sld [smem:[#allocation3]] }
  0x1c   :  { %115 = vrot.lane.b32.xlu1 %v61_v2, %s307_s4  ;;  %v45_v9 = vld [vmem:[%s44_s14] sm:$0x1]  ;;  %s96_s15 = scalar_lea.vmem [#allocation4], %s227_s7  ;;  %s309_s24 = smov [#allocation7]  }
  0x1d   :  { %123 = vrot.lane.b32.xlu0 %v73_v4, %s306_s25  ;;  %v97_v10 = vld [vmem:[%s96_s15] sm:$0x1]  ;;  %s48_s16 = scalar_lea.vmem [#allocation4], %s215_s12  ;;  %s187_s27 = sshll.u32 %s352_s2, 4  ;;  %s188_s27 = int_to_ptr.hbm [resolvable:$true] %s187_s27 }
  0x1e   :  { %v49_v11 = vld [vmem:[%s48_s16] sm:$0x1]  ;;  %s68_s20 = scalar_lea.vmem [#allocation4], %s220_s17 }
  0x1f   :  { %v69_v18 = vld [vmem:[%s68_s20] sm:$0x1]  ;;  %s52_s21 = scalar_lea.vmem [#allocation4], %s216_s18 }
  0x20   :  { %139 = vrot.lane.b32.xlu2 %v93_v5, %s307_s4  ;;  %v53_v21 = vld [vmem:[%s52_s21] sm:$0x1]  ;;  %s84_s22 = scalar_lea.vmem [#allocation4], %s224_s19 }
  0x21   :  { %v85_v24 = vld [vmem:[%s84_s22] sm:$0x1]  ;;  %s36_s23 = scalar_lea.vmem [#allocation4], %s35_s0 }
  0x22   :  { %v37_v28 = vld [vmem:[%s36_s23] sm:$0x1] }
  0x24   :  { %119 = vrot.lane.b32.xlu1 %v65_v6, %s308_s11 }
  0x25   :  { %99 = vrot.lane.b32.xlu0 %v41_v7, %s306_s25  ;;  %s185_s25 = sshll.u32 %s309_s24, 4  ;;  %s186_s25 = int_to_ptr.vmem [resolvable:$true] %s185_s25 }
  0x28   :  { %131 = vrot.lane.b32.xlu2 %v81_v8, %s308_s11 }
  0x2c   :  { %103 = vrot.lane.b32.xlu1 %v45_v9, %s307_s4 }
  0x2d   :  { %143 = vrot.lane.b32.xlu0 %v97_v10, %s308_s11 }
  0x30   :  { %107 = vrot.lane.b32.xlu2 %v49_v11, %s308_s11 }
  0x72   :  { %v128_v12 = vpop.permute.xlu2 %127 }
  0x7a   :  { %v140_v15 = vpop.permute.xlu2 %139 }
  0x82   :  { %v132_v19 = vpop.permute.xlu2 %131 }
  0x86   :  { %v136_v13 = vpop.permute.xlu1 %135 }
  0x87   :  { %v112_v14 = vpop.permute.xlu0 %111  ;;  %v158_v29 = vsel %vm146_vm0, %v85_v24, %v136_v13 }
  0x88   :  { %v152_v25 = vsel %vm146_vm0, %v53_v21, %v112_v14  ;;  %v159_v36 = vsel %vm148_vm1, %v158_v29, %v140_v15 }
  0x8a   :  { %v108_v31 = vpop.permute.xlu2 %107 }
  0x8e   :  { %v116_v16 = vpop.permute.xlu1 %115 }
  0x8f   :  { %v124_v17 = vpop.permute.xlu0 %123  ;;  %v153_v26 = vsel %vm148_vm1, %v152_v25, %v116_v16 }
  0x90   :  { %v155_v23 = vsel %vm146_vm0, %v69_v18, %v124_v17 }
  0x91   :  { %v156_v27 = vsel %vm148_vm1, %v155_v23, %v128_v12 }
  0x92   :  { %v157_v32 = vsel %vm150_vm2, %v156_v27, %v132_v19 }
  0x93   :  { %v166_v42 = vrot.slane %v157_v32, 6 }
  0x96   :  { %v120_v20 = vpop.permute.xlu1 %119 }
  0x97   :  { %v100_v22 = vpop.permute.xlu0 %99  ;;  %v154_v30 = vsel %vm150_vm2, %v153_v26, %v120_v20 }
  0x98   :  { %v147_v33 = vsel %vm146_vm0, %v37_v28, %v100_v22  ;;  %v165_v37 = vrot.slane %v154_v30, 7 }
  0x9e   :  { %v104_v34 = vpop.permute.xlu1 %103 }
  0x9f   :  { %v149_v38 = vsel %vm148_vm1, %v147_v33, %v104_v34  ;;  %v144_v39 = vpop.permute.xlu0 %143 }
  0xa0   :  { %v160_v40 = vsel %vm150_vm2, %v159_v36, %v144_v39  ;;  %v151_v41 = vsel %vm150_vm2, %v149_v38, %v108_v31 }
  0xa1   :  { %v167_v43 = vrot.slane %v160_v40, 5  ;;  %v169_v44 = vsel %vm168_vm3, %v151_v41, %v165_v37 }
  0xa3   :  { %v171_v45 = vsel %vm170_vm4, %v166_v42, %v167_v43 }
  0xa4   :  { %v173_v46 = vsel %vm172_vm5, %v169_v44, %v171_v45 }
  0xa5   :  { %179 = vst.msk [vmem:[#allocation7] sm:$0xf] %vm177_vm6, %v173_v46 }
  0xa6   :  { %190 = dma.vmem_to_hbm [thread:$0]  %s186_s25, 64, %s188_s27, [#allocation6]  }
  0xa7   :  { %300 = dma.done.wait [#allocation6], 64  }
  0xa8   :  { %301 = vsyncadd [#allocation6], 4294967232 }
  0xa9   :  { %195 = vsyncpa [#allocation5], 1 }
  0xaa   :  { %196 = vsyncpa [#allocation6], 1 }

</bundles_post_ra>
